<compile_context>
chip_gen: v5e
topology: v5e:2x2
jax: 0.10.0
libtpu: 0.0.40
codegen_flags: <defaults>
</compile_context>

<pallas_src>
import math

import jax
import jax.numpy as jnp
from jax import lax
from jax.experimental import pallas as pl
from jax.experimental.pallas import tpu as pltpu


LN_EPS = 1e-5  # torch.nn.LayerNorm default


def _gelu(x):
    # Hugging Face gelu: x * 0.5 * (1 + erf(x / sqrt(2)))  (exact, matches spec)
    return x * 0.5 * (1.0 + lax.erf(x / math.sqrt(2.0)))


def _round_up(x, m):
    return (x + m - 1) // m * m


# ---------------------------------------------------------------------------
# Stage 1: Linear(d,d) + GELU + LayerNorm on the gathered masked rows.
# ---------------------------------------------------------------------------
def hnorm_kernel(h_ref,                 # VMEM (TR, D)  bf16  gathered masked rows
                 w1_ref, b1_ref,        # VMEM (D, D) bf16, (1, D) f32
                 gamma_ref, beta_ref,   # VMEM (1, D) f32, (1, D) f32
                 out_ref):              # VMEM (TR, D)  bf16
    h = jnp.dot(h_ref[...], w1_ref[...],
                preferred_element_type=jnp.float32) + b1_ref[...]
    h = _gelu(h)
    mean = jnp.mean(h, axis=-1, keepdims=True)
    var = jnp.mean((h - mean) ** 2, axis=-1, keepdims=True)
    h = (h - mean) * lax.rsqrt(var + LN_EPS)
    h = h * gamma_ref[...] + beta_ref[...]
    out_ref[...] = h.astype(out_ref.dtype)


# ---------------------------------------------------------------------------
# Stage 2: decoder  (TR, D) @ (D, TV) + bd  ->  lane-dense (TR, TV) logits.
# ---------------------------------------------------------------------------
def decoder_kernel(hn_ref, wd_ref, bd_ref, out_ref):
    out_ref[...] = (jnp.dot(hn_ref[...], wd_ref[...],
                            preferred_element_type=jnp.float32)
                    + bd_ref[...]).astype(out_ref.dtype)


def patient_ssl_head(sequence_output, masked_pos, params,
                     *, row_block=None, v_block=None, out_dtype=jnp.float32):
    """Pallas implementation of the is_finetune == False branch."""
    B, L, D = sequence_output.shape
    M = masked_pos.shape[1]
    V = params["wd"].shape[1]

    # --- torch.gather(sequence_output, 1, masked_pos expanded over d_model) ---
    # Done in XLA so only M rows per batch reach the kernels and all B*M rows
    # are packed into MXU-sized blocks.  Clamp guards padded / out-of-range
    # positions (VMEM has no runtime bounds check).
    pos = jnp.clip(masked_pos, 0, L - 1)
    idx = jnp.broadcast_to(pos[:, :, None], (B, M, D))
    h = jnp.take_along_axis(sequence_output, idx, axis=1).reshape(B * M, D)

    N = B * M
    if row_block is None:
        row_block = min(_round_up(N, 16), 512)
    Np = _round_up(N, row_block)
    if Np != N:
        h = jnp.pad(h, ((0, Np - N), (0, 0)))

    if v_block is None:
        v_block = min(_round_up(V, 128), 2048)
    Vp = _round_up(V, v_block)
    wd, bd = params["wd"], params["bd"]
    if Vp != V:
        wd = jnp.pad(wd, ((0, 0), (0, Vp - V)))
        bd = jnp.pad(bd, ((0, 0), (0, Vp - V)))

    # bf16 MXU operands, f32 accumulation; biases / LN params stay f32.
    h_bf = h.astype(jnp.bfloat16)
    w1_bf = params["w1"].astype(jnp.bfloat16)
    wd_bf = wd.astype(jnp.bfloat16)

    n_row = Np // row_block
    n_voc = Vp // v_block

    # ---------------- Stage 1: hnorm = LN(gelu(h @ W1 + b1)) ----------------
    hnorm = pl.pallas_call(
        hnorm_kernel,
        grid_spec=pltpu.PrefetchScalarGridSpec(
            num_scalar_prefetch=0,
            grid=(n_row,),
            in_specs=[
                pl.BlockSpec((row_block, D), lambda r: (r, 0)),  # gathered rows
                pl.BlockSpec((D, D), lambda r: (0, 0)),          # W1 (in, out)
                pl.BlockSpec((1, D), lambda r: (0, 0)),          # b1
                pl.BlockSpec((1, D), lambda r: (0, 0)),          # ln gamma
                pl.BlockSpec((1, D), lambda r: (0, 0)),          # ln beta
            ],
            out_specs=pl.BlockSpec((row_block, D), lambda r: (r, 0)),
        ),
        out_shape=jax.ShapeDtypeStruct((Np, D), jnp.bfloat16),
        compiler_params=pltpu.CompilerParams(
            dimension_semantics=("parallel",),
            vmem_limit_bytes=40 * 1024 * 1024,
        ),
        cost_estimate=pl.CostEstimate(
            flops=2 * Np * D * D + 12 * Np * D,
            transcendentals=Np * D,                       # erf
            bytes_accessed=2 * Np * D * 2 + D * D * 2 + 3 * D * 4,
        ),
    )(h_bf, w1_bf, params["b1"], params["gamma"], params["beta"])

    # ---------------- Stage 2: logits = hnorm @ Wd + bd ---------------------
    # Grid is (vocab, rows) with rows INNERMOST: the Wd block index (0, v) is
    # constant across the inner loop, so each Wd tile is fetched from HBM once
    # in total; the small hnorm rows are the re-streamed operand instead.
    out_bytes = jnp.dtype(out_dtype).itemsize
    logits = pl.pallas_call(
        decoder_kernel,
        grid_spec=pltpu.PrefetchScalarGridSpec(
            num_scalar_prefetch=0,
            grid=(n_voc, n_row),
            in_specs=[
                pl.BlockSpec((row_block, D), lambda v, r: (r, 0)),   # hnorm rows
                pl.BlockSpec((D, v_block), lambda v, r: (0, v)),     # Wd tile
                pl.BlockSpec((1, v_block), lambda v, r: (0, v)),     # bd tile
            ],
            out_specs=pl.BlockSpec((row_block, v_block), lambda v, r: (r, v)),
        ),
        out_shape=jax.ShapeDtypeStruct((Np, Vp), out_dtype),
        compiler_params=pltpu.CompilerParams(
            # Every grid point writes a distinct output tile and there is no
            # scratch carry, so both axes are parallel (v7x megacore shards
            # the vocab axis even when B*M yields only one row block).
            dimension_semantics=("parallel", "parallel"),
            vmem_limit_bytes=40 * 1024 * 1024,
        ),
        cost_estimate=pl.CostEstimate(
            flops=2 * Np * D * Vp,
            transcendentals=0,
            bytes_accessed=(n_voc * Np * D * 2          # hnorm re-streamed per vocab tile
                            + D * Vp * 2                # Wd read once
                            + Vp * 4                    # bd
                            + Np * Vp * out_bytes),     # logits writeback
        ),
    )(hnorm, wd_bf, bd)

    return logits[:N, :V].reshape(B, M, V)


# ----------------------------------------------------------------------------
# Plain-JAX glue: BERT stand-in + pure-JAX reference of the head.
# ----------------------------------------------------------------------------
def stub_bert_embedding_model(input_ids, attention_mask, position_ids,
                              tok_emb, pos_emb):
    # TODO(synk): the pretrained BERT encoder is an external module; using a
    # deterministic embedding-sum stand-in for bert_outputs[0].
    seq = tok_emb[input_ids] + pos_emb[position_ids]
    seq = seq * attention_mask[..., None].astype(seq.dtype)
    return seq


def reference_head(sequence_output, masked_pos, params):
    B, L, D = sequence_output.shape
    idx = jnp.broadcast_to(masked_pos[:, :, None], (B, masked_pos.shape[1], D))
    h = jnp.take_along_axis(sequence_output, idx, axis=1)        # gather
    h = h @ params["w1"] + params["b1"]                           # linear
    h = _gelu(h)                                                  # gelu
    mean = jnp.mean(h, axis=-1, keepdims=True)
    var = jnp.mean((h - mean) ** 2, axis=-1, keepdims=True)
    h = (h - mean) / jnp.sqrt(var + LN_EPS)
    h = h * params["gamma"] + params["beta"]                      # layernorm
    return h @ params["wd"] + params["bd"]                        # decoder


if __name__ == "__main__":
    B, L, D, V, M = 2, 16, 128, 256, 8   # batch, seq, d_model, vocab, n_masked

    key = jax.random.PRNGKey(0)
    k = jax.random.split(key, 10)

    # Deterministic parameter init (shapes from the module's __init__),
    # weights stored pre-transposed as [in, out].
    params = {
        "w1":    0.05 * jax.random.normal(k[0], (D, D), jnp.float32),
        "b1":    0.05 * jax.random.normal(k[1], (1, D), jnp.float32),
        "gamma": 1.0 + 0.1 * jax.random.normal(k[2], (1, D), jnp.float32),
        "beta":  0.1 * jax.random.normal(k[3], (1, D), jnp.float32),
        "wd":    0.05 * jax.random.normal(k[4], (D, V), jnp.float32),
        "bd":    0.05 * jax.random.normal(k[5], (1, V), jnp.float32),
    }
    tok_emb = 0.1 * jax.random.normal(k[6], (V, D), jnp.float32)
    pos_emb = 0.1 * jax.random.normal(k[7], (L, D), jnp.float32)

    input_ids = jax.random.randint(k[8], (B, L), 0, V, dtype=jnp.int32)
    attention_mask = jnp.ones((B, L), dtype=jnp.int32)
    position_ids = jnp.broadcast_to(jnp.arange(L, dtype=jnp.int32), (B, L))
    masked_pos = jax.random.randint(k[9], (B, M), 0, L, dtype=jnp.int32)

    # "bert_outputs[0]"
    sequence_output = stub_bert_embedding_model(
        input_ids, attention_mask, position_ids, tok_emb, pos_emb)

    # Pallas kernels (is_finetune == False path -> pred_score of shape (B, M, V))
    pred_score = patient_ssl_head(sequence_output, masked_pos, params)
    pred_score = jax.block_until_ready(pred_score)

    # Pure-JAX f32 reference check.  Kernels use bf16 MXU operands (and a bf16
    # hnorm intermediate) with f32 accumulation, so the tolerance is the
    # standard mixed-precision one.
    ref = reference_head(sequence_output, masked_pos, params)
    assert pred_score.shape == (B, M, V)
    max_err = float(jnp.max(jnp.abs(pred_score - ref)))
    assert jnp.allclose(pred_score, ref, atol=3e-2, rtol=3e-2), max_err

    print("KERNEL_OK")
</pallas_src>

<mosaic_0001>
module attributes {stable_mosaic.version = 11 : i64} {
  func.func @hnorm_kernel(%arg0: i32, %arg1: memref<16x128xbf16, #tpu.memory_space<vmem>>, %arg2: memref<128x128xbf16, #tpu.memory_space<vmem>>, %arg3: memref<1x128xf32, #tpu.memory_space<vmem>>, %arg4: memref<1x128xf32, #tpu.memory_space<vmem>>, %arg5: memref<1x128xf32, #tpu.memory_space<vmem>>, %arg6: memref<16x128xbf16, #tpu.memory_space<vmem>>) attributes {dimension_semantics = [#tpu.dimension_semantics<parallel>], iteration_bounds = array<i64: 1>, scalar_prefetch = 0 : i64, scratch_operands = 0 : i64, tpu.core_type = #tpu.core_type<tc>, window_params = [{transform_indices = @transform_0, window_bounds = array<i64: 16, 128>}, {pipeline_mode = #tpu.pipeline_mode<synchronous>, transform_indices = @transform_1, window_bounds = array<i64: 128, 128>}, {pipeline_mode = #tpu.pipeline_mode<synchronous>, transform_indices = @transform_2, window_bounds = array<i64: 1, 128>}, {pipeline_mode = #tpu.pipeline_mode<synchronous>, transform_indices = @transform_3, window_bounds = array<i64: 1, 128>}, {pipeline_mode = #tpu.pipeline_mode<synchronous>, transform_indices = @transform_4, window_bounds = array<i64: 1, 128>}, {transform_indices = @transform_5, window_bounds = array<i64: 16, 128>}]} {
    %c0 = arith.constant 0 : index
    %c0_0 = arith.constant 0 : index
    %0 = vector.load %arg1[%c0, %c0_0] : memref<16x128xbf16, #tpu.memory_space<vmem>>, vector<16x128xbf16>
    %c0_1 = arith.constant 0 : index
    %c0_2 = arith.constant 0 : index
    %1 = vector.load %arg2[%c0_1, %c0_2] : memref<128x128xbf16, #tpu.memory_space<vmem>>, vector<128x128xbf16>
    %cst = arith.constant dense<0.000000e+00> : vector<16x128xf32>
    %2 = tpu.matmul %0, %1, %cst {dimension_numbers = #tpu.dot_dimension_numbers<[1], [0], [0], [1], [0, 0, 1, 1], [], []>} : vector<16x128xbf16>, vector<128x128xbf16>, vector<16x128xf32> -> vector<16x128xf32>
    %c0_3 = arith.constant 0 : index
    %c0_4 = arith.constant 0 : index
    %3 = vector.load %arg3[%c0_3, %c0_4] : memref<1x128xf32, #tpu.memory_space<vmem>>, vector<1x128xf32>
    %4 = vector.broadcast %3 : vector<1x128xf32> to vector<16x128xf32>
    %5 = arith.addf %2, %4 : vector<16x128xf32>
    %cst_5 = arith.constant 5.000000e-01 : f32
    %6 = vector.broadcast %cst_5 : f32 to vector<16x128xf32>
    %7 = arith.mulf %5, %6 : vector<16x128xf32>
    %cst_6 = arith.constant 1.41421354 : f32
    %8 = vector.broadcast %cst_6 : f32 to vector<16x128xf32>
    %9 = arith.divf %5, %8 : vector<16x128xf32>
    %10 = math.erf %9 : vector<16x128xf32>
    %cst_7 = arith.constant 1.000000e+00 : f32
    %11 = vector.broadcast %cst_7 : f32 to vector<16x128xf32>
    %12 = arith.addf %11, %10 : vector<16x128xf32>
    %13 = arith.mulf %7, %12 : vector<16x128xf32>
    %cst_8 = arith.constant dense<0.000000e+00> : vector<16xf32>
    %14 = vector.multi_reduction <add>, %13, %cst_8 [1] : vector<16x128xf32> to vector<16xf32>
    %15 = vector.shape_cast %14 : vector<16xf32> to vector<16x1xf32>
    %cst_9 = arith.constant 1.280000e+02 : f32
    %16 = vector.broadcast %cst_9 : f32 to vector<16x1xf32>
    %17 = arith.divf %15, %16 : vector<16x1xf32>
    %18 = vector.broadcast %17 : vector<16x1xf32> to vector<16x128xf32>
    %19 = arith.subf %13, %18 : vector<16x128xf32>
    %20 = arith.mulf %19, %19 : vector<16x128xf32>
    %cst_10 = arith.constant dense<0.000000e+00> : vector<16xf32>
    %21 = vector.multi_reduction <add>, %20, %cst_10 [1] : vector<16x128xf32> to vector<16xf32>
    %22 = vector.shape_cast %21 : vector<16xf32> to vector<16x1xf32>
    %cst_11 = arith.constant 1.280000e+02 : f32
    %23 = vector.broadcast %cst_11 : f32 to vector<16x1xf32>
    %24 = arith.divf %22, %23 : vector<16x1xf32>
    %25 = vector.broadcast %17 : vector<16x1xf32> to vector<16x128xf32>
    %26 = arith.subf %13, %25 : vector<16x128xf32>
    %cst_12 = arith.constant 9.99999974E-6 : f32
    %27 = vector.broadcast %cst_12 : f32 to vector<16x1xf32>
    %28 = arith.addf %24, %27 : vector<16x1xf32>
    %29 = math.rsqrt %28 : vector<16x1xf32>
    %30 = vector.broadcast %29 : vector<16x1xf32> to vector<16x128xf32>
    %31 = arith.mulf %26, %30 : vector<16x128xf32>
    %c0_13 = arith.constant 0 : index
    %c0_14 = arith.constant 0 : index
    %32 = vector.load %arg4[%c0_13, %c0_14] : memref<1x128xf32, #tpu.memory_space<vmem>>, vector<1x128xf32>
    %33 = vector.broadcast %32 : vector<1x128xf32> to vector<16x128xf32>
    %34 = arith.mulf %31, %33 : vector<16x128xf32>
    %c0_15 = arith.constant 0 : index
    %c0_16 = arith.constant 0 : index
    %35 = vector.load %arg5[%c0_15, %c0_16] : memref<1x128xf32, #tpu.memory_space<vmem>>, vector<1x128xf32>
    %36 = vector.broadcast %35 : vector<1x128xf32> to vector<16x128xf32>
    %37 = arith.addf %34, %36 : vector<16x128xf32>
    %38 = arith.truncf %37 : vector<16x128xf32> to vector<16x128xbf16>
    %c0_17 = arith.constant 0 : index
    %c0_18 = arith.constant 0 : index
    %39 = vector.load %arg6[%c0_17, %c0_18] : memref<16x128xbf16, #tpu.memory_space<vmem>>, vector<16x128xbf16>
    tpu.vector_store %arg6[%c0_17, %c0_18], %38 {strides = array<i32>} : memref<16x128xbf16, #tpu.memory_space<vmem>>, vector<16x128xbf16>,
    return
  }
  func.func @transform_0(%arg0: i32) -> (i32, i32) {
    %c0_i32 = arith.constant 0 : i32
    %c0_i32_0 = arith.constant 0 : i32
    return %arg0, %c0_i32 : i32, i32
  }
  func.func @transform_1(%arg0: i32) -> (i32, i32) {
    %c0_i32 = arith.constant 0 : i32
    %c0_i32_0 = arith.constant 0 : i32
    %c0_i32_1 = arith.constant 0 : i32
    return %c0_i32, %c0_i32_0 : i32, i32
  }
  func.func @transform_2(%arg0: i32) -> (i32, i32) {
    %c0_i32 = arith.constant 0 : i32
    %c0_i32_0 = arith.constant 0 : i32
    %c0_i32_1 = arith.constant 0 : i32
    return %c0_i32, %c0_i32_0 : i32, i32
  }
  func.func @transform_3(%arg0: i32) -> (i32, i32) {
    %c0_i32 = arith.constant 0 : i32
    %c0_i32_0 = arith.constant 0 : i32
    %c0_i32_1 = arith.constant 0 : i32
    return %c0_i32, %c0_i32_0 : i32, i32
  }
  func.func @transform_4(%arg0: i32) -> (i32, i32) {
    %c0_i32 = arith.constant 0 : i32
    %c0_i32_0 = arith.constant 0 : i32
    %c0_i32_1 = arith.constant 0 : i32
    return %c0_i32, %c0_i32_0 : i32, i32
  }
  func.func @transform_5(%arg0: i32) -> (i32, i32) {
    %c0_i32 = arith.constant 0 : i32
    %c0_i32_0 = arith.constant 0 : i32
    return %arg0, %c0_i32 : i32, i32
  }
}

</mosaic_0001>

<bundles_post_ra>
// kernel: tpu_custom_call.1
= control target key start
LH: loop header
LB: loop body
LE: loop exit
PB: predicated region body
PF: predicated region fallthrough
CT: control target
= control target key end

     0   :  { %10 = vsyncpa [#allocation3], 0  ;;  %s550_s0 = inlined_call_operand.hbm [shape: bf16[16,128], index: 0, kind: input, shape index: {}]   ;;  %s551_s1 = inlined_call_operand.hbm [shape: bf16[128,128], index: 1, kind: input, shape index: {}]   ;;  %s552_s2 = inlined_call_operand.vmem [shape: f32[1,128], index: 2, kind: input, shape index: {}]   ;;  %s553_s3 = inlined_call_operand.vmem [shape: f32[1,128], index: 3, kind: input, shape index: {}]   ;;  %s554_s4 = inlined_call_operand.vmem [shape: f32[1,128], index: 4, kind: input, shape index: {}]   ;;  %s555_s5 = inlined_call_operand.hbm [shape: bf16[16,128], index: 5, kind: output, shape index: {}]  }
   0x1   :  { %11 = vsyncpa [#allocation6], 0 }
   0x2   :  { %12 = vsyncpa [#allocation4], 0  ;;  %s17_s20 = sshll.u32 %s550_s0, 4  ;;  %s473_s21 = smov [#allocation2]   ;;  %s18_s20 = int_to_ptr.hbm [resolvable:$true] %s17_s20 }
   0x3   :  { %s19_s22 = sshll.u32 %s473_s21, 4  ;;  %s30_s25 = sshll.u32 %s551_s1, 4  ;;  %s20_s22 = int_to_ptr.vmem [resolvable:$true] %s19_s22  ;;  %s31_s25 = int_to_ptr.hbm [resolvable:$true] %s30_s25 }
   0x4   :  { %s474_s26 = smov 64   ;;  %s475_s27 = smov 4  }
   0x5   :  { %25 = dma.hbm_to_vmem [thread:$0]  %s18_s20, 128, %s20_s22, [#allocation3], %s474_s26, %s474_s26, %s475_s27  }
   0x6   :  { %s476_s28 = smov [#allocation5]  }
   0x7   :  { %s32_s29 = sshll.u32 %s476_s28, 4  ;;  %s33_s29 = int_to_ptr.vmem [resolvable:$true] %s32_s29 }
   0x8   :  { %38 = dma.hbm_to_vmem [thread:$0]  %s31_s25, 1024, %s33_s29, [#allocation6], %s474_s26, %s474_s26, %s475_s27  }
   0x9   :  { %467 = dma.done.wait [#allocation3], 128  }
   0xa   :  { %468 = vsyncadd [#allocation3], 4294967168 }
   0xb   :  { %469 = dma.done.wait [#allocation6], 1024  }
   0xc   :  { %470 = vsyncadd [#allocation6], 4294966272  ;;  %v367_v0 = vld [vmem:[#allocation5 + $0x38] sm:$0xff]  ;;  %v366_v1 = vld [vmem:[#allocation5 + $0x30] sm:$0xff]  ;;  %v477_v9 = vmov 1.4142135  }
   0xd   :  { %129 = vmatpush.bf16.msra.mxu0 %v367_v0  ;;  %v365_v2 = vld [vmem:[#allocation5 + $0x28] sm:$0xff]  ;;  %v364_v3 = vld [vmem:[#allocation5 + $0x20] sm:$0xff]  ;;  %v363_v4 = vld [vmem:[#allocation5 + $0x18] sm:$0xff]  ;;  %383 = vrcp.f32 %v477_v9  ;;  %s479_s8 = smov [#allocation7]   ;;  %s307_s12 = sshll.u32 %s555_s5, 4  ;;  %s308_s12 = int_to_ptr.hbm [resolvable:$true] %s307_s12 }
   0xe   :  { %v362_v5 = vld [vmem:[#allocation5 + $0x10] sm:$0xff]  ;;  %v361_v6 = vld [vmem:[#allocation5 + $0x8] sm:$0xff]  ;;  %v360_v7 = vld [vmem:[#allocation5] sm:$0xff]  ;;  %s305_s9 = sshll.u32 %s479_s8, 4  ;;  %s306_s9 = int_to_ptr.vmem [resolvable:$true] %s305_s9 }
   0xf   :  { %v359_v8 = vld [vmem:[#allocation2] sm:$0xff] }
  0x10   :  { %v380_v15 = vld [vmem:[%s552_s2] ss:$0 sm:$0xff] }
  0x11   :  { %130 = vmatpush.bf16.msra.mxu0 %v366_v1 }
  0x13   :  { %v384_v10 = vpop.eup %383 }
  0x14   :  { %v146_v11 = vmul.f32 1.4142135, %v384_v10  ;;  %vm150_vm0 = vweird.f32 %v384_v10 }
  0x15   :  { %131 = vmatpush.bf16.msra.mxu0 %v365_v2 }
  0x16   :  { %v147_v12 = vsub.f32 1.0, %v146_v11 }
  0x18   :  { %v148_v13 = vmul.f32 %v384_v10, %v147_v12 }
  0x19   :  { %132 = vmatpush.bf16.msra.mxu0 %v364_v3 }
  0x1a   :  { %v149_v14 = vadd.f32 %v384_v10, %v148_v13 }
  0x1c   :  { %v151_v17 = vsel %vm150_vm0, %v384_v10, %v149_v14 }
  0x1d   :  { %133 = vmatpush.bf16.msra.mxu0 %v363_v4 }
  0x21   :  { %134 = vmatpush.bf16.msra.mxu0 %v362_v5 }
  0x25   :  { %135 = vmatpush.bf16.msra.mxu0 %v361_v6 }
  0x29   :  { %136 = vmatpush.bf16.msra.mxu0 %v360_v7 }
  0x2c   :  { %137 = vmatmul.bf16.vlgmr.msra.gmra.mxu0 %v359_v8 }
  0xa9   :  { %v138_v16 = vpop.f32.mrf.mxu0 }
  0xaa   :  { %v525_v18 = vadd.f32 %v380_v15, %v138_v16 }
  0xac   :  { %v152_v19 = vmul.f32 %v151_v17, %v525_v18 }
  0xae   :  { %v154_v20 = vmul.f32 %v152_v19, %v152_v19 }
  0xb0   :  { %v155_v21 = vmin.f32 %v154_v20, 16.0 }
  0xb1   :  { %v140_v22 = vpop.f32.mrf.mxu0 }
  0xb2   :  { %v156_v23 = vmul.f32 2.1237322e-06, %v155_v21  ;;  %v528_v24 = vadd.f32 %v380_v15, %v140_v22  ;;  %v167_v25 = vmul.f32 3.8918573e-05, %v155_v21 }
  0xb4   :  { %v157_v26 = vadd.f32 0.00028619796, %v156_v23  ;;  %v531_v27 = vmul.f32 %v151_v17, %v528_v24  ;;  %v168_v28 = vadd.f32 0.001143296, %v167_v25  ;;  %v143_v25 = vmul.f32 0.5, %v525_v18 }
  0xb5   :  { %v478_v18 = vmov 128.0  }
  0xb6   :  { %v158_v29 = vmul.f32 %v157_v26, %v155_v21  ;;  %v194_v30 = vmul.f32 %v531_v27, %v531_v27  ;;  %v169_v31 = vmul.f32 %v168_v28, %v155_v21 }
  0xb8   :  { %v195_v32 = vmin.f32 %v194_v30, 16.0  ;;  %v170_v33 = vadd.f32 0.014752088, %v169_v31  ;;  %v159_v34 = vadd.f32 0.0036580483, %v158_v29 }
  0xba   :  { %v196_v35 = vmul.f32 2.1237322e-06, %v195_v32  ;;  %v171_v36 = vmul.f32 %v170_v33, %v155_v21  ;;  %v207_v37 = vmul.f32 3.8918573e-05, %v195_v32  ;;  %v160_v40 = vmul.f32 %v159_v34, %v155_v21 }
  0xbc   :  { %v197_v38 = vadd.f32 0.00028619796, %v196_v35  ;;  %v172_v39 = vadd.f32 0.112945676, %v171_v36  ;;  %v208_v41 = vadd.f32 0.001143296, %v207_v37 }
  0xbd   :  { %v161_v46 = vadd.f32 0.05243302, %v160_v40  ;;  %v144_v35 = vmul.f32 0.5, %v528_v24 }
  0xbe   :  { %v198_v42 = vmul.f32 %v197_v38, %v195_v32  ;;  %v173_v43 = vmul.f32 %v172_v39, %v155_v21  ;;  %v209_v44 = vmul.f32 %v208_v41, %v195_v32 }
  0xbf   :  { %v162_v52 = vmul.f32 %v161_v46, %v155_v21 }
  0xc0   :  { %v174_v45 = vadd.f32 0.4994258, %v173_v43  ;;  %v210_v47 = vadd.f32 0.014752088, %v209_v44  ;;  %v199_v48 = vadd.f32 0.0036580483, %v198_v42 }
  0xc1   :  { %v163_v56 = vadd.f32 0.18741608, %v162_v52 }
  0xc2   :  { %v175_v49 = vmul.f32 %v174_v45, %v155_v21  ;;  %v211_v50 = vmul.f32 %v210_v47, %v195_v32  ;;  %v200_v54 = vmul.f32 %v199_v48, %v195_v32 }
  0xc3   :  { %v164_v61 = vmul.f32 %v163_v56, %v155_v21 }
  0xc4   :  { %v176_v51 = vadd.f32 1.0, %v175_v49  ;;  %v212_v53 = vadd.f32 0.112945676, %v211_v50  ;;  %v201_v58 = vadd.f32 0.05243302, %v200_v54 }
  0xc5   :  { %v165_v3 = vadd.f32 1.1283791, %v164_v61 }
  0xc6   :  { %385 = vrcp.f32 %v176_v51  ;;  %v213_v55 = vmul.f32 %v212_v53, %v195_v32  ;;  %v202_v0 = vmul.f32 %v201_v58, %v195_v32  ;;  %v188_v2 = vand.u32 2147483648, %v176_v51 }
  0xc7   :  { %v186_v5 = vand.u32 2147483647, %v176_v51  ;;  %vm182_vm2 = vweird.f32 %v176_v51  ;;  %v166_v10 = vmul.f32 %v165_v3, %v152_v19 }
  0xc8   :  { %v214_v57 = vadd.f32 0.4994258, %v213_v55  ;;  %v203_v6 = vadd.f32 0.18741608, %v202_v0  ;;  %v189_v8 = vor.u32 1.1754944e-38, %v188_v2 }
  0xc9   :  { %vm187_vm4 = vcmp.eq.f32.partialorder %v186_v5, 8.507059e+37  ;;  %v381_v5 = vld [vmem:[%s553_s3] ss:$0 sm:$0xff] }
  0xca   :  { %v215_v59 = vmul.f32 %v214_v57, %v195_v32  ;;  %v204_v12 = vmul.f32 %v203_v6, %v195_v32 }
  0xcc   :  { %v386_v60 = vpop.eup %385  ;;  %v216_v63 = vadd.f32 1.0, %v215_v59  ;;  %v205_v21 = vadd.f32 1.1283791, %v204_v12 }
  0xcd   :  { %v178_v62 = vmul.f32 %v386_v60, %v176_v51  ;;  %vm183_vm1 = vweird.f32 %v386_v60 }
  0xce   :  { %387 = vrcp.f32 %v216_v63  ;;  %vm184_vm3 = vmor %vm182_vm2, %vm183_vm1  ;;  %v228_v20 = vand.u32 2147483648, %v216_v63  ;;  %v226_v23 = vand.u32 2147483647, %v216_v63  ;;  %vm222_vm6 = vweird.f32 %v216_v63 }
  0xcf   :  { %v179_v1 = vsub.f32 1.0, %v178_v62  ;;  %v206_v30 = vmul.f32 %v205_v21, %v531_v27  ;;  %389 = vrcp.f32 %v478_v18 }
  0xd0   :  { %v229_v19 = vor.u32 1.1754944e-38, %v228_v20  ;;  %vm227_vm8 = vcmp.eq.f32.partialorder %v226_v23, 8.507059e+37 }
  0xd1   :  { %v180_v4 = vmul.f32 %v386_v60, %v179_v1 }
  0xd3   :  { %v181_v7 = vadd.f32 %v386_v60, %v180_v4 }
  0xd4   :  { %v388_v9 = vpop.eup %387 }
  0xd5   :  { %v185_v11 = vsel %vm184_vm3, %v386_v60, %v181_v7  ;;  %v218_v14 = vmul.f32 %v388_v9, %v216_v63  ;;  %vm223_vm5 = vweird.f32 %v388_v9  ;;  %v390_v38 = vpop.eup %389 }
  0xd6   :  { %v190_v13 = vsel %vm187_vm4, %v189_v8, %v185_v11  ;;  %vm224_vm7 = vmor %vm222_vm6, %vm223_vm5  ;;  %v243_v39 = vmul.f32 128.0, %v390_v38  ;;  %vm247_vm9 = vweird.f32 %v390_v38 }
  0xd7   :  { %v191_v15 = vmul.f32 %v190_v13, %v166_v10  ;;  %v219_v16 = vsub.f32 1.0, %v218_v14  ;;  %v382_v10 = vld [vmem:[%s554_s4] ss:$0 sm:$0xff] }
  0xd8   :  { %v244_v40 = vsub.f32 1.0, %v243_v39 }
  0xd9   :  { %v357_v17 = vclamps-f32 %v191_v15, 1.0  ;;  %v220_v22 = vmul.f32 %v388_v9, %v219_v16 }
  0xda   :  { %v245_v41 = vmul.f32 %v390_v38, %v244_v40 }
  0xdb   :  { %v234_v26 = vadd.f32 1.0, %v357_v17  ;;  %v221_v28 = vadd.f32 %v388_v9, %v220_v22 }
  0xdc   :  { %v246_v42 = vadd.f32 %v390_v38, %v245_v41 }
  0xdd   :  { %v236_v29 = vmul.f32 %v234_v26, %v143_v25  ;;  %v225_v31 = vsel %vm224_vm7, %v388_v9, %v221_v28 }
  0xde   :  { %v230_v32 = vsel %vm227_vm8, %v229_v19, %v225_v31  ;;  %v248_v27 = vsel %vm247_vm9, %v390_v38, %v246_v42 }
  0xdf   :  { %238 = vadd.xlane.f32.xlu0 %v236_v29  ;;  %v231_v33 = vmul.f32 %v230_v32, %v206_v30 }
  0xe1   :  { %v358_v34 = vclamps-f32 %v231_v33, 1.0 }
  0xe3   :  { %v235_v36 = vadd.f32 1.0, %v358_v34 }
  0xe5   :  { %v237_v37 = vmul.f32 %v235_v36, %v144_v35 }
  0xe7   :  { %240 = vadd.xlane.f32.xlu0 %v237_v37 }
 0x152   :  { %v239_v43 = vpop.xlane.xlu0 %238 }
 0x153   :  { %v249_v44 = vmul.f32 %v248_v27, %v239_v43 }
 0x155   :  { %v251_v45 = vsub.f32 %v236_v29, %v249_v44 }
 0x157   :  { %v253_v46 = vmul.f32 %v251_v45, %v251_v45 }
 0x159   :  { %255 = vadd.xlane.f32.xlu1 %v253_v46 }
 0x15a   :  { %v241_v47 = vpop.xlane.xlu0 %240 }
 0x15b   :  { %v250_v48 = vmul.f32 %v248_v27, %v241_v47 }
 0x15d   :  { %v252_v24 = vsub.f32 %v237_v37, %v250_v48 }
 0x15f   :  { %v254_v49 = vmul.f32 %v252_v24, %v252_v24 }
 0x161   :  { %257 = vadd.xlane.f32.xlu1 %v254_v49 }
 0x1cc   :  { %v256_v50 = vpop.xlane.xlu1 %255 }
 0x1cd   :  { %v259_v51 = vmul.f32 %v256_v50, %v248_v27 }
 0x1cf   :  { %v261_v52 = vadd.f32 1e-05, %v259_v51 }
 0x1d1   :  { %391 = vrsqrt.f32 %v261_v52  ;;  %vm269_vm11 = vweird.f32 %v261_v52 }
 0x1d4   :  { %v258_v53 = vpop.xlane.xlu1 %257 }
 0x1d5   :  { %v260_v54 = vmul.f32 %v258_v53, %v248_v27 }
 0x1d7   :  { %v392_v55 = vpop.eup %391  ;;  %v262_v57 = vadd.f32 1e-05, %v260_v54 }
 0x1d8   :  { %v264_v56 = vmul.f32 %v392_v55, %v261_v52  ;;  %vm270_vm10 = vweird.f32 %v392_v55 }
 0x1d9   :  { %393 = vrsqrt.f32 %v262_v57  ;;  %vm271_vm12 = vmor %vm269_vm11, %vm270_vm10  ;;  %vm279_vm14 = vweird.f32 %v262_v57 }
 0x1da   :  { %v265_v58 = vmul.f32 %v392_v55, %v264_v56 }
 0x1dc   :  { %v266_v59 = vmul.f32 0.5, %v265_v58 }
 0x1de   :  { %v267_v60 = vsub.f32 1.5, %v266_v59 }
 0x1df   :  { %v394_v61 = vpop.eup %393 }
 0x1e0   :  { %v268_v62 = vmul.f32 %v392_v55, %v267_v60  ;;  %v274_v63 = vmul.f32 %v394_v61, %v262_v57  ;;  %vm280_vm13 = vweird.f32 %v394_v61 }
 0x1e1   :  { %vm281_vm15 = vmor %vm279_vm14, %vm280_vm13 }
 0x1e2   :  { %v275_v0 = vmul.f32 %v394_v61, %v274_v63  ;;  %v272_v1 = vsel %vm271_vm12, %v392_v55, %v268_v62 }
 0x1e3   :  { %v283_v4 = vmul.f32 %v272_v1, %v251_v45 }
 0x1e4   :  { %v276_v2 = vmul.f32 0.5, %v275_v0 }
 0x1e5   :  { %v289_v9 = vmul.f32 %v381_v5, %v283_v4 }
 0x1e6   :  { %v277_v3 = vsub.f32 1.5, %v276_v2 }
 0x1e7   :  { %v295_v12 = vadd.f32 %v382_v10, %v289_v9 }
 0x1e8   :  { %v278_v6 = vmul.f32 %v394_v61, %v277_v3 }
 0x1ea   :  { %v282_v7 = vsel %vm281_vm15, %v394_v61, %v278_v6 }
 0x1eb   :  { %v284_v8 = vmul.f32 %v282_v7, %v252_v24 }
 0x1ed   :  { %v290_v11 = vmul.f32 %v381_v5, %v284_v8 }
 0x1ef   :  { %v296_v13 = vadd.f32 %v382_v10, %v290_v11 }
 0x1f1   :  { %v371_v14 = vpack.c.bf16 %v296_v13, %v295_v12 }
 0x1f3   :  { %372 = vst [vmem:[#allocation7] sm:$0xff] %v371_v14  }
 0x1f4   :  { %313 = dma.vmem_to_hbm [thread:$0]  %s306_s9, 128, %s308_s12, [#allocation4], %s474_s26, %s474_s26, %s475_s27  }
 0x1f5   :  { %471 = dma.done.wait [#allocation4], 128  }
 0x1f6   :  { %472 = vsyncadd [#allocation4], 4294967168 }
 0x1f7   :  { %318 = vsyncpa [#allocation3], 1 }
 0x1f8   :  { %319 = vsyncpa [#allocation6], 1 }
 0x1f9   :  { %320 = vsyncpa [#allocation4], 1 }

</bundles_post_ra>
